<compile_context>
chip_gen: v5e
topology: v5e:2x2
jax: 0.10.0
libtpu: 0.0.40
codegen_flags: <defaults>
</compile_context>

<pallas_src>
import math
import functools

import jax
import jax.numpy as jnp
from jax.experimental import pallas as pl
from jax.experimental.pallas import tpu as pltpu


def _attention_kernel(x_ref, wq_ref, wk_ref, wv_ref, wproj_ref, bproj_ref, *refs,
                      num_heads, head_dim, q_tile, return_attn):
    # x_ref:    (1, N, C)   full sequence of the current batch (compute dtype)
    # wq_ref:   (C, C)      q weight (softmax scale pre-folded)
    # wk_ref:   (C, C)      k weight
    # wv_ref:   (C, C)      v weight
    # wproj_ref:(C, C)      proj weight (transposed: out = ctx @ wproj)
    # bproj_ref:(1, C)      f32 proj bias
    # outputs:  out (1, tq, C)  [+ attn (1, H, tq, N) when return_attn]
    # scratch:  k_sc/v_sc (H, N, hd), q_sc/ctx_hm (H, tq, hd), ctx_flat (tq, C)
    if return_attn:
        out_ref, attn_ref, k_sc, v_sc, q_sc, ctx_hm, ctx_flat = refs
    else:
        out_ref, k_sc, v_sc, q_sc, ctx_hm, ctx_flat = refs
        attn_ref = None

    H, hd, tq = num_heads, head_dim, q_tile
    cdt = k_sc.dtype
    qi = pl.program_id(1)

    # ---- K / V projection: once per batch, cached in head-major VMEM scratch ---------
    # (qi is the innermost, "arbitrary" grid axis, so this scratch persists across the
    #  remaining query tiles of the batch.)
    @pl.when(qi == 0)
    def _():
        x_all = x_ref[0]                                               # (N, C)
        k_full = jnp.dot(x_all, wk_ref[...], preferred_element_type=jnp.float32)
        for hh in range(H):                                            # static lane slices
            k_sc[hh] = k_full[:, hh * hd:(hh + 1) * hd].astype(cdt)
        v_full = jnp.dot(x_all, wv_ref[...], preferred_element_type=jnp.float32)
        for hh in range(H):
            v_sc[hh] = v_full[:, hh * hd:(hh + 1) * hd].astype(cdt)

    # ---- Q projection for this query tile: one full-width (tq, C) @ (C, C) matmul ----
    row0 = pl.multiple_of(qi * tq, tq)
    x_q = x_ref[0, pl.ds(row0, tq), :]                                 # (tq, C)
    q_full = jnp.dot(x_q, wq_ref[...], preferred_element_type=jnp.float32)  # scale folded
    for hh in range(H):
        q_sc[hh] = q_full[:, hh * hd:(hh + 1) * hd].astype(cdt)

    # ---- per-head attention: fori_loop bounds live ranges; only leading-axis dyn idx --
    def head_body(h, carry):
        q_h = q_sc[h]                                                  # (tq, hd)
        k_h = k_sc[h]                                                  # (N,  hd)
        s = jax.lax.dot_general(q_h, k_h, (((1,), (1,)), ((), ())),
                                preferred_element_type=jnp.float32)    # (tq, N) f32
        s = s - jnp.max(s, axis=-1, keepdims=True)
        p = jnp.exp(s)
        p = p * pl.reciprocal(jnp.sum(p, axis=-1, keepdims=True), approx=True)
        if return_attn:
            attn_ref[0, h] = p.astype(attn_ref.dtype)
        ctx_h = jnp.dot(p.astype(cdt), v_sc[h], preferred_element_type=jnp.float32)
        ctx_hm[h] = ctx_h.astype(cdt)                                  # (tq, hd)
        return carry

    jax.lax.fori_loop(0, H, head_body, 0)

    # ---- assemble the (tq, C) context slab and do ONE wide output projection ---------
    for hh in range(H):                                                # static lane stores
        ctx_flat[:, hh * hd:(hh + 1) * hd] = ctx_hm[hh]
    out = jnp.dot(ctx_flat[...], wproj_ref[...], preferred_element_type=jnp.float32)
    out_ref[0] = (out + bproj_ref[0].astype(jnp.float32)).astype(out_ref.dtype)


def _make_spec(shape, index_map, *, single_buffer=False):
    """BlockSpec helper; constant-index operands request single buffering."""
    if single_buffer:
        try:
            return pl.BlockSpec(shape, index_map, pipeline_mode=pl.Buffered(1))
        except Exception:  # older jax without pipeline_mode / Buffered: fall back
            pass
    return pl.BlockSpec(shape, index_map)


def _vmem_capacity_bytes():
    try:
        cap = getattr(pltpu.get_tpu_info(), "vmem_capacity_bytes", None)
        if cap:
            return int(cap)
    except Exception:
        pass
    return 64 * 1024 * 1024  # conservative (v7x per-core) fallback


def attention_forward(x, w_qkv_t, w_proj_t, b_proj, *, num_heads, qk_scale=None,
                      compute_dtype=jnp.bfloat16, attn_dtype=None, q_tile=None,
                      return_attn=True):
    """Multi-head self-attention forward matching the torch module.

    x:        (B, N, C)
    w_qkv_t:  (C, 3C)   qkv weight, stored transposed (qkv = x @ w_qkv_t; cols = [q|k|v])
    w_proj_t: (C, C)    proj weight, stored transposed (out = ctx @ w_proj_t + b)
    b_proj:   (C,)
    Returns (out, attn) when return_attn else out.
    """
    B, N, C = x.shape
    H = num_heads
    hd = C // H
    scale = qk_scale if qk_scale is not None else hd ** (-0.5)
    cdt = compute_dtype
    attn_dt = attn_dtype if attn_dtype is not None else cdt
    out_dtype = x.dtype

    # Generation-aware tiling / VMEM budget.
    vmem_cap = _vmem_capacity_bytes()
    if vmem_cap <= 64 * 1024 * 1024:           # v7x: 64 MiB per TensorCore
        target_tq, vmem_limit = 64, 48 * 1024 * 1024
    else:                                      # v5e / v6e: 128 MiB physical VMEM
        target_tq, vmem_limit = 256, 96 * 1024 * 1024

    if q_tile is not None:
        tq = q_tile
    else:
        tq = min(N, target_tq)
        while N % tq:
            tq -= 1
        if tq < min(N, 8):
            tq = N                              # ragged N: fall back to a single tile
    assert N % tq == 0, "query tile must divide N"

    # Weight prep (once, outside the kernel): scale folded into Wq, everything in cdt.
    wqkv = w_qkv_t.astype(jnp.float32)
    wq = (wqkv[:, 0 * C:1 * C] * scale).astype(cdt)
    wk = wqkv[:, 1 * C:2 * C].astype(cdt)
    wv = wqkv[:, 2 * C:3 * C].astype(cdt)
    wproj = w_proj_t.astype(cdt)
    b2 = b_proj.reshape(1, C).astype(jnp.float32)
    x_c = x.astype(cdt)

    kernel = functools.partial(_attention_kernel, num_heads=H, head_dim=hd,
                               q_tile=tq, return_attn=return_attn)

    in_specs = [
        _make_spec((1, N, C), lambda b, qi: (b, 0, 0)),                        # x (full seq)
        _make_spec((C, C), lambda b, qi: (0, 0), single_buffer=True),          # Wq (scaled)
        _make_spec((C, C), lambda b, qi: (0, 0), single_buffer=True),          # Wk
        _make_spec((C, C), lambda b, qi: (0, 0), single_buffer=True),          # Wv
        _make_spec((C, C), lambda b, qi: (0, 0), single_buffer=True),          # Wproj
        _make_spec((1, C), lambda b, qi: (0, 0), single_buffer=True),          # proj bias
    ]
    out_spec_x = pl.BlockSpec((1, tq, C), lambda b, qi: (b, qi, 0))
    if return_attn:
        out_shape = (jax.ShapeDtypeStruct((B, N, C), out_dtype),
                     jax.ShapeDtypeStruct((B, H, N, N), attn_dt))
        out_specs = (out_spec_x,
                     pl.BlockSpec((1, H, tq, N), lambda b, qi: (b, 0, qi, 0)))
    else:
        out_shape = jax.ShapeDtypeStruct((B, N, C), out_dtype)
        out_specs = out_spec_x

    scratch_shapes = [
        pltpu.VMEM((H, N, hd), cdt),    # K cache (head-major, persists across q-tiles)
        pltpu.VMEM((H, N, hd), cdt),    # V cache
        pltpu.VMEM((H, tq, hd), cdt),   # Q (head-major)
        pltpu.VMEM((H, tq, hd), cdt),   # ctx (head-major)
        pltpu.VMEM((tq, C), cdt),       # ctx slab for the wide output projection
    ]

    result = pl.pallas_call(
        kernel,
        out_shape=out_shape,
        grid_spec=pltpu.PrefetchScalarGridSpec(
            num_scalar_prefetch=0,
            grid=(B, N // tq),
            in_specs=in_specs,
            out_specs=out_specs,
            scratch_shapes=scratch_shapes,
        ),
        compiler_params=pltpu.CompilerParams(
            # qi must be "arbitrary": the K/V scratch initialized at qi==0 is reused by
            # the remaining query tiles of the same batch.
            dimension_semantics=("parallel", "arbitrary"),
            vmem_limit_bytes=vmem_limit,
        ),
    )(x_c, wq, wk, wv, wproj, b2)

    if return_attn:
        out, attn = result
        return out, attn
    return result


def attention_reference(x, w_qkv_t, w_proj_t, b_proj, *, num_heads):
    """Plain-JAX f32 reference mirroring the PyTorch forward."""
    B, N, C = x.shape
    H = num_heads
    hd = C // H
    scale = hd ** (-0.5)
    qkv = jnp.einsum('bnc,cd->bnd', x, w_qkv_t)                 # (B, N, 3C)
    qkv = qkv.reshape(B, N, 3, H, hd).transpose(2, 0, 3, 1, 4)  # (3, B, H, N, hd)
    q, k, v = qkv[0], qkv[1], qkv[2]
    attn = jnp.einsum('bhnd,bhmd->bhnm', q, k) * scale
    attn = jax.nn.softmax(attn, axis=-1)
    ctx = jnp.einsum('bhnm,bhmd->bhnd', attn, v)
    ctx = ctx.transpose(0, 2, 1, 3).reshape(B, N, C)
    out = jnp.einsum('bnc,cd->bnd', ctx, w_proj_t) + b_proj
    return out, attn


if __name__ == "__main__":
    B, N, C = 2, 8, 32
    num_heads = 8

    key = jax.random.PRNGKey(0)
    kx, kqkv, kproj, kb = jax.random.split(key, 4)

    x = jax.random.normal(kx, (B, N, C), dtype=jnp.float32)
    # Deterministic synthetic weights (qkv_bias=False as in the default module).
    w_qkv_t = jax.random.normal(kqkv, (C, 3 * C), dtype=jnp.float32) * (1.0 / math.sqrt(C))
    w_proj_t = jax.random.normal(kproj, (C, C), dtype=jnp.float32) * (1.0 / math.sqrt(C))
    b_proj = jax.random.normal(kb, (C,), dtype=jnp.float32) * 0.01

    out_ref, attn_ref = attention_reference(x, w_qkv_t, w_proj_t, b_proj, num_heads=num_heads)

    # --- f32 compute path (tight check; only source of error is the approx reciprocal) ---
    out32, attn32 = attention_forward(x, w_qkv_t, w_proj_t, b_proj,
                                      num_heads=num_heads, compute_dtype=jnp.float32)
    out32 = jax.block_until_ready(out32)
    attn32 = jax.block_until_ready(attn32)
    assert out32.shape == (B, N, C) and attn32.shape == (B, num_heads, N, N)
    assert jnp.allclose(out32, out_ref, atol=1e-2, rtol=1e-2)
    assert jnp.allclose(attn32, attn_ref, atol=1e-2, rtol=1e-2)

    # --- bf16 compute path (MXU-optimized; looser tolerance vs f32 reference) ---
    out16, attn16 = attention_forward(x, w_qkv_t, w_proj_t, b_proj,
                                      num_heads=num_heads, compute_dtype=jnp.bfloat16)
    out16 = jax.block_until_ready(out16)
    attn16 = jax.block_until_ready(attn16)
    assert out16.shape == (B, N, C) and attn16.shape == (B, num_heads, N, N)
    assert jnp.allclose(out16.astype(jnp.float32), out_ref, atol=1e-1, rtol=1e-1)
    assert jnp.allclose(attn16.astype(jnp.float32), attn_ref, atol=5e-2, rtol=5e-2)

    # --- fast path: attention probabilities skipped (no B*H*N^2 writeback) ---
    out_fast = attention_forward(x, w_qkv_t, w_proj_t, b_proj,
                                 num_heads=num_heads, compute_dtype=jnp.bfloat16,
                                 return_attn=False)
    out_fast = jax.block_until_ready(out_fast)
    assert out_fast.shape == (B, N, C)
    assert jnp.allclose(out_fast.astype(jnp.float32), out_ref, atol=1e-1, rtol=1e-1)

    print("KERNEL_OK")
</pallas_src>

<mosaic_0001>
module attributes {stable_mosaic.version = 11 : i64} {
  func.func @_attention_kernel(%arg0: i32, %arg1: i32, %arg2: memref<1x8x32xf32, #tpu.memory_space<vmem>>, %arg3: memref<32x32xf32, #tpu.memory_space<vmem>>, %arg4: memref<32x32xf32, #tpu.memory_space<vmem>>, %arg5: memref<32x32xf32, #tpu.memory_space<vmem>>, %arg6: memref<32x32xf32, #tpu.memory_space<vmem>>, %arg7: memref<1x32xf32, #tpu.memory_space<vmem>>, %arg8: memref<1x8x32xf32, #tpu.memory_space<vmem>>, %arg9: memref<1x8x8x8xf32, #tpu.memory_space<vmem>>, %arg10: memref<8x8x4xf32, #tpu.memory_space<vmem>>, %arg11: memref<8x8x4xf32, #tpu.memory_space<vmem>>, %arg12: memref<8x8x4xf32, #tpu.memory_space<vmem>>, %arg13: memref<8x8x4xf32, #tpu.memory_space<vmem>>, %arg14: memref<8x32xf32, #tpu.memory_space<vmem>>) attributes {dimension_semantics = [#tpu.dimension_semantics<parallel>, #tpu.dimension_semantics<arbitrary>], iteration_bounds = array<i64: 2, 1>, scalar_prefetch = 0 : i64, scratch_operands = 5 : i64, tpu.core_type = #tpu.core_type<tc>, window_params = [{transform_indices = @transform_0, window_bounds = array<i64: 1, 8, 32>}, {pipeline_mode = #tpu.pipeline_mode<synchronous>, transform_indices = @transform_1, window_bounds = array<i64: 32, 32>}, {pipeline_mode = #tpu.pipeline_mode<synchronous>, transform_indices = @transform_2, window_bounds = array<i64: 32, 32>}, {pipeline_mode = #tpu.pipeline_mode<synchronous>, transform_indices = @transform_3, window_bounds = array<i64: 32, 32>}, {pipeline_mode = #tpu.pipeline_mode<synchronous>, transform_indices = @transform_4, window_bounds = array<i64: 32, 32>}, {pipeline_mode = #tpu.pipeline_mode<synchronous>, transform_indices = @transform_5, window_bounds = array<i64: 1, 32>}, {transform_indices = @transform_6, window_bounds = array<i64: 1, 8, 32>}, {transform_indices = @transform_7, window_bounds = array<i64: 1, 8, 8, 8>}]} {
    %c0_i32 = arith.constant 0 : i32
    %0 = arith.cmpi eq, %arg1, %c0_i32 : i32
    %1 = arith.extui %0 : i1 to i32
    %c0_i32_0 = arith.constant 0 : i32
    %2 = arith.cmpi ne, %1, %c0_i32_0 : i32
    scf.if %2 {
      %c0_68 = arith.constant 0 : index
      %c0_69 = arith.constant 0 : index
      %c0_70 = arith.constant 0 : index
      %78 = vector.load %arg2[%c0_68, %c0_69, %c0_70] : memref<1x8x32xf32, #tpu.memory_space<vmem>>, vector<1x8x32xf32>
      %79 = vector.shape_cast %78 : vector<1x8x32xf32> to vector<8x32xf32>
      %c0_71 = arith.constant 0 : index
      %c0_72 = arith.constant 0 : index
      %80 = vector.load %arg4[%c0_71, %c0_72] : memref<32x32xf32, #tpu.memory_space<vmem>>, vector<32x32xf32>
      %cst_73 = arith.constant dense<0.000000e+00> : vector<8x32xf32>
      %81 = tpu.matmul %79, %80, %cst_73 {dimension_numbers = #tpu.dot_dimension_numbers<[1], [0], [0], [1], [0, 0, 1, 1], [], []>} : vector<8x32xf32>, vector<32x32xf32>, vector<8x32xf32> -> vector<8x32xf32>
      %82 = vector.extract_strided_slice %81 {offsets = [0, 0], sizes = [8, 4], strides = [1, 1]} : vector<8x32xf32> to vector<8x4xf32>
      %c0_74 = arith.constant 0 : index
      %c0_75 = arith.constant 0 : index
      %c0_76 = arith.constant 0 : index
      %83 = vector.load %arg10[%c0_74, %c0_75, %c0_76] : memref<8x8x4xf32, #tpu.memory_space<vmem>>, vector<1x8x4xf32>
      %84 = vector.shape_cast %83 : vector<1x8x4xf32> to vector<8x4xf32>
      %85 = vector.shape_cast %82 : vector<8x4xf32> to vector<1x8x4xf32>
      tpu.vector_store %arg10[%c0_74, %c0_75, %c0_76], %85 {strides = array<i32>} : memref<8x8x4xf32, #tpu.memory_space<vmem>>, vector<1x8x4xf32>,
      %86 = vector.extract_strided_slice %81 {offsets = [0, 4], sizes = [8, 4], strides = [1, 1]} : vector<8x32xf32> to vector<8x4xf32>
      %c1_77 = arith.constant 1 : index
      %c0_78 = arith.constant 0 : index
      %c0_79 = arith.constant 0 : index
      %87 = vector.load %arg10[%c1_77, %c0_78, %c0_79] : memref<8x8x4xf32, #tpu.memory_space<vmem>>, vector<1x8x4xf32>
      %88 = vector.shape_cast %87 : vector<1x8x4xf32> to vector<8x4xf32>
      %89 = vector.shape_cast %86 : vector<8x4xf32> to vector<1x8x4xf32>
      tpu.vector_store %arg10[%c1_77, %c0_78, %c0_79], %89 {strides = array<i32>} : memref<8x8x4xf32, #tpu.memory_space<vmem>>, vector<1x8x4xf32>,
      %90 = vector.extract_strided_slice %81 {offsets = [0, 8], sizes = [8, 4], strides = [1, 1]} : vector<8x32xf32> to vector<8x4xf32>
      %c2_80 = arith.constant 2 : index
      %c0_81 = arith.constant 0 : index
      %c0_82 = arith.constant 0 : index
      %91 = vector.load %arg10[%c2_80, %c0_81, %c0_82] : memref<8x8x4xf32, #tpu.memory_space<vmem>>, vector<1x8x4xf32>
      %92 = vector.shape_cast %91 : vector<1x8x4xf32> to vector<8x4xf32>
      %93 = vector.shape_cast %90 : vector<8x4xf32> to vector<1x8x4xf32>
      tpu.vector_store %arg10[%c2_80, %c0_81, %c0_82], %93 {strides = array<i32>} : memref<8x8x4xf32, #tpu.memory_space<vmem>>, vector<1x8x4xf32>,
      %94 = vector.extract_strided_slice %81 {offsets = [0, 12], sizes = [8, 4], strides = [1, 1]} : vector<8x32xf32> to vector<8x4xf32>
      %c3_83 = arith.constant 3 : index
      %c0_84 = arith.constant 0 : index
      %c0_85 = arith.constant 0 : index
      %95 = vector.load %arg10[%c3_83, %c0_84, %c0_85] : memref<8x8x4xf32, #tpu.memory_space<vmem>>, vector<1x8x4xf32>
      %96 = vector.shape_cast %95 : vector<1x8x4xf32> to vector<8x4xf32>
      %97 = vector.shape_cast %94 : vector<8x4xf32> to vector<1x8x4xf32>
      tpu.vector_store %arg10[%c3_83, %c0_84, %c0_85], %97 {strides = array<i32>} : memref<8x8x4xf32, #tpu.memory_space<vmem>>, vector<1x8x4xf32>,
      %98 = vector.extract_strided_slice %81 {offsets = [0, 16], sizes = [8, 4], strides = [1, 1]} : vector<8x32xf32> to vector<8x4xf32>
      %c4_86 = arith.constant 4 : index
      %c0_87 = arith.constant 0 : index
      %c0_88 = arith.constant 0 : index
      %99 = vector.load %arg10[%c4_86, %c0_87, %c0_88] : memref<8x8x4xf32, #tpu.memory_space<vmem>>, vector<1x8x4xf32>
      %100 = vector.shape_cast %99 : vector<1x8x4xf32> to vector<8x4xf32>
      %101 = vector.shape_cast %98 : vector<8x4xf32> to vector<1x8x4xf32>
      tpu.vector_store %arg10[%c4_86, %c0_87, %c0_88], %101 {strides = array<i32>} : memref<8x8x4xf32, #tpu.memory_space<vmem>>, vector<1x8x4xf32>,
      %102 = vector.extract_strided_slice %81 {offsets = [0, 20], sizes = [8, 4], strides = [1, 1]} : vector<8x32xf32> to vector<8x4xf32>
      %c5_89 = arith.constant 5 : index
      %c0_90 = arith.constant 0 : index
      %c0_91 = arith.constant 0 : index
      %103 = vector.load %arg10[%c5_89, %c0_90, %c0_91] : memref<8x8x4xf32, #tpu.memory_space<vmem>>, vector<1x8x4xf32>
      %104 = vector.shape_cast %103 : vector<1x8x4xf32> to vector<8x4xf32>
      %105 = vector.shape_cast %102 : vector<8x4xf32> to vector<1x8x4xf32>
      tpu.vector_store %arg10[%c5_89, %c0_90, %c0_91], %105 {strides = array<i32>} : memref<8x8x4xf32, #tpu.memory_space<vmem>>, vector<1x8x4xf32>,
      %106 = vector.extract_strided_slice %81 {offsets = [0, 24], sizes = [8, 4], strides = [1, 1]} : vector<8x32xf32> to vector<8x4xf32>
      %c6_92 = arith.constant 6 : index
      %c0_93 = arith.constant 0 : index
      %c0_94 = arith.constant 0 : index
      %107 = vector.load %arg10[%c6_92, %c0_93, %c0_94] : memref<8x8x4xf32, #tpu.memory_space<vmem>>, vector<1x8x4xf32>
      %108 = vector.shape_cast %107 : vector<1x8x4xf32> to vector<8x4xf32>
      %109 = vector.shape_cast %106 : vector<8x4xf32> to vector<1x8x4xf32>
      tpu.vector_store %arg10[%c6_92, %c0_93, %c0_94], %109 {strides = array<i32>} : memref<8x8x4xf32, #tpu.memory_space<vmem>>, vector<1x8x4xf32>,
      %110 = vector.extract_strided_slice %81 {offsets = [0, 28], sizes = [8, 4], strides = [1, 1]} : vector<8x32xf32> to vector<8x4xf32>
      %c7_95 = arith.constant 7 : index
      %c0_96 = arith.constant 0 : index
      %c0_97 = arith.constant 0 : index
      %111 = vector.load %arg10[%c7_95, %c0_96, %c0_97] : memref<8x8x4xf32, #tpu.memory_space<vmem>>, vector<1x8x4xf32>
      %112 = vector.shape_cast %111 : vector<1x8x4xf32> to vector<8x4xf32>
      %113 = vector.shape_cast %110 : vector<8x4xf32> to vector<1x8x4xf32>
      tpu.vector_store %arg10[%c7_95, %c0_96, %c0_97], %113 {strides = array<i32>} : memref<8x8x4xf32, #tpu.memory_space<vmem>>, vector<1x8x4xf32>,
      %c0_98 = arith.constant 0 : index
      %c0_99 = arith.constant 0 : index
      %114 = vector.load %arg5[%c0_98, %c0_99] : memref<32x32xf32, #tpu.memory_space<vmem>>, vector<32x32xf32>
      %cst_100 = arith.constant dense<0.000000e+00> : vector<8x32xf32>
      %115 = tpu.matmul %79, %114, %cst_100 {dimension_numbers = #tpu.dot_dimension_numbers<[1], [0], [0], [1], [0, 0, 1, 1], [], []>} : vector<8x32xf32>, vector<32x32xf32>, vector<8x32xf32> -> vector<8x32xf32>
      %116 = vector.extract_strided_slice %115 {offsets = [0, 0], sizes = [8, 4], strides = [1, 1]} : vector<8x32xf32> to vector<8x4xf32>
      %c0_101 = arith.constant 0 : index
      %c0_102 = arith.constant 0 : index
      %c0_103 = arith.constant 0 : index
      %117 = vector.load %arg11[%c0_101, %c0_102, %c0_103] : memref<8x8x4xf32, #tpu.memory_space<vmem>>, vector<1x8x4xf32>
      %118 = vector.shape_cast %117 : vector<1x8x4xf32> to vector<8x4xf32>
      %119 = vector.shape_cast %116 : vector<8x4xf32> to vector<1x8x4xf32>
      tpu.vector_store %arg11[%c0_101, %c0_102, %c0_103], %119 {strides = array<i32>} : memref<8x8x4xf32, #tpu.memory_space<vmem>>, vector<1x8x4xf32>,
      %120 = vector.extract_strided_slice %115 {offsets = [0, 4], sizes = [8, 4], strides = [1, 1]} : vector<8x32xf32> to vector<8x4xf32>
      %c1_104 = arith.constant 1 : index
      %c0_105 = arith.constant 0 : index
      %c0_106 = arith.constant 0 : index
      %121 = vector.load %arg11[%c1_104, %c0_105, %c0_106] : memref<8x8x4xf32, #tpu.memory_space<vmem>>, vector<1x8x4xf32>
      %122 = vector.shape_cast %121 : vector<1x8x4xf32> to vector<8x4xf32>
      %123 = vector.shape_cast %120 : vector<8x4xf32> to vector<1x8x4xf32>
      tpu.vector_store %arg11[%c1_104, %c0_105, %c0_106], %123 {strides = array<i32>} : memref<8x8x4xf32, #tpu.memory_space<vmem>>, vector<1x8x4xf32>,
      %124 = vector.extract_strided_slice %115 {offsets = [0, 8], sizes = [8, 4], strides = [1, 1]} : vector<8x32xf32> to vector<8x4xf32>
      %c2_107 = arith.constant 2 : index
      %c0_108 = arith.constant 0 : index
      %c0_109 = arith.constant 0 : index
      %125 = vector.load %arg11[%c2_107, %c0_108, %c0_109] : memref<8x8x4xf32, #tpu.memory_space<vmem>>, vector<1x8x4xf32>
      %126 = vector.shape_cast %125 : vector<1x8x4xf32> to vector<8x4xf32>
      %127 = vector.shape_cast %124 : vector<8x4xf32> to vector<1x8x4xf32>
      tpu.vector_store %arg11[%c2_107, %c0_108, %c0_109], %127 {strides = array<i32>} : memref<8x8x4xf32, #tpu.memory_space<vmem>>, vector<1x8x4xf32>,
      %128 = vector.extract_strided_slice %115 {offsets = [0, 12], sizes = [8, 4], strides = [1, 1]} : vector<8x32xf32> to vector<8x4xf32>
      %c3_110 = arith.constant 3 : index
      %c0_111 = arith.constant 0 : index
      %c0_112 = arith.constant 0 : index
      %129 = vector.load %arg11[%c3_110, %c0_111, %c0_112] : memref<8x8x4xf32, #tpu.memory_space<vmem>>, vector<1x8x4xf32>
      %130 = vector.shape_cast %129 : vector<1x8x4xf32> to vector<8x4xf32>
      %131 = vector.shape_cast %128 : vector<8x4xf32> to vector<1x8x4xf32>
      tpu.vector_store %arg11[%c3_110, %c0_111, %c0_112], %131 {strides = array<i32>} : memref<8x8x4xf32, #tpu.memory_space<vmem>>, vector<1x8x4xf32>,
      %132 = vector.extract_strided_slice %115 {offsets = [0, 16], sizes = [8, 4], strides = [1, 1]} : vector<8x32xf32> to vector<8x4xf32>
      %c4_113 = arith.constant 4 : index
      %c0_114 = arith.constant 0 : index
      %c0_115 = arith.constant 0 : index
      %133 = vector.load %arg11[%c4_113, %c0_114, %c0_115] : memref<8x8x4xf32, #tpu.memory_space<vmem>>, vector<1x8x4xf32>
      %134 = vector.shape_cast %133 : vector<1x8x4xf32> to vector<8x4xf32>
      %135 = vector.shape_cast %132 : vector<8x4xf32> to vector<1x8x4xf32>
      tpu.vector_store %arg11[%c4_113, %c0_114, %c0_115], %135 {strides = array<i32>} : memref<8x8x4xf32, #tpu.memory_space<vmem>>, vector<1x8x4xf32>,
      %136 = vector.extract_strided_slice %115 {offsets = [0, 20], sizes = [8, 4], strides = [1, 1]} : vector<8x32xf32> to vector<8x4xf32>
      %c5_116 = arith.constant 5 : index
      %c0_117 = arith.constant 0 : index
      %c0_118 = arith.constant 0 : index
      %137 = vector.load %arg11[%c5_116, %c0_117, %c0_118] : memref<8x8x4xf32, #tpu.memory_space<vmem>>, vector<1x8x4xf32>
      %138 = vector.shape_cast %137 : vector<1x8x4xf32> to vector<8x4xf32>
      %139 = vector.shape_cast %136 : vector<8x4xf32> to vector<1x8x4xf32>
      tpu.vector_store %arg11[%c5_116, %c0_117, %c0_118], %139 {strides = array<i32>} : memref<8x8x4xf32, #tpu.memory_space<vmem>>, vector<1x8x4xf32>,
      %140 = vector.extract_strided_slice %115 {offsets = [0, 24], sizes = [8, 4], strides = [1, 1]} : vector<8x32xf32> to vector<8x4xf32>
      %c6_119 = arith.constant 6 : index
      %c0_120 = arith.constant 0 : index
      %c0_121 = arith.constant 0 : index
      %141 = vector.load %arg11[%c6_119, %c0_120, %c0_121] : memref<8x8x4xf32, #tpu.memory_space<vmem>>, vector<1x8x4xf32>
      %142 = vector.shape_cast %141 : vector<1x8x4xf32> to vector<8x4xf32>
      %143 = vector.shape_cast %140 : vector<8x4xf32> to vector<1x8x4xf32>
      tpu.vector_store %arg11[%c6_119, %c0_120, %c0_121], %143 {strides = array<i32>} : memref<8x8x4xf32, #tpu.memory_space<vmem>>, vector<1x8x4xf32>,
      %144 = vector.extract_strided_slice %115 {offsets = [0, 28], sizes = [8, 4], strides = [1, 1]} : vector<8x32xf32> to vector<8x4xf32>
      %c7_122 = arith.constant 7 : index
      %c0_123 = arith.constant 0 : index
      %c0_124 = arith.constant 0 : index
      %145 = vector.load %arg11[%c7_122, %c0_123, %c0_124] : memref<8x8x4xf32, #tpu.memory_space<vmem>>, vector<1x8x4xf32>
      %146 = vector.shape_cast %145 : vector<1x8x4xf32> to vector<8x4xf32>
      %147 = vector.shape_cast %144 : vector<8x4xf32> to vector<1x8x4xf32>
      tpu.vector_store %arg11[%c7_122, %c0_123, %c0_124], %147 {strides = array<i32>} : memref<8x8x4xf32, #tpu.memory_space<vmem>>, vector<1x8x4xf32>,
    } else {
    }
    %c8_i32 = arith.constant 8 : i32
    %3 = arith.muli %arg1, %c8_i32 : i32
    %4 = tpu.assume_multiple %3, 8 : i32
    %c0 = arith.constant 0 : index
    %5 = arith.index_cast %4 : i32 to index
    %c0_1 = arith.constant 0 : index
    %6 = vector.load %arg2[%c0, %5, %c0_1] : memref<1x8x32xf32, #tpu.memory_space<vmem>>, vector<1x8x32xf32>
    %7 = vector.shape_cast %6 : vector<1x8x32xf32> to vector<8x32xf32>
    %c0_2 = arith.constant 0 : index
    %c0_3 = arith.constant 0 : index
    %8 = vector.load %arg3[%c0_2, %c0_3] : memref<32x32xf32, #tpu.memory_space<vmem>>, vector<32x32xf32>
    %cst = arith.constant dense<0.000000e+00> : vector<8x32xf32>
    %9 = tpu.matmul %7, %8, %cst {dimension_numbers = #tpu.dot_dimension_numbers<[1], [0], [0], [1], [0, 0, 1, 1], [], []>} : vector<8x32xf32>, vector<32x32xf32>, vector<8x32xf32> -> vector<8x32xf32>
    %10 = vector.extract_strided_slice %9 {offsets = [0, 0], sizes = [8, 4], strides = [1, 1]} : vector<8x32xf32> to vector<8x4xf32>
    %c0_4 = arith.constant 0 : index
    %c0_5 = arith.constant 0 : index
    %c0_6 = arith.constant 0 : index
    %11 = vector.load %arg12[%c0_4, %c0_5, %c0_6] : memref<8x8x4xf32, #tpu.memory_space<vmem>>, vector<1x8x4xf32>
    %12 = vector.shape_cast %11 : vector<1x8x4xf32> to vector<8x4xf32>
    %13 = vector.shape_cast %10 : vector<8x4xf32> to vector<1x8x4xf32>
    tpu.vector_store %arg12[%c0_4, %c0_5, %c0_6], %13 {strides = array<i32>} : memref<8x8x4xf32, #tpu.memory_space<vmem>>, vector<1x8x4xf32>,
    %14 = vector.extract_strided_slice %9 {offsets = [0, 4], sizes = [8, 4], strides = [1, 1]} : vector<8x32xf32> to vector<8x4xf32>
    %c1 = arith.constant 1 : index
    %c0_7 = arith.constant 0 : index
    %c0_8 = arith.constant 0 : index
    %15 = vector.load %arg12[%c1, %c0_7, %c0_8] : memref<8x8x4xf32, #tpu.memory_space<vmem>>, vector<1x8x4xf32>
    %16 = vector.shape_cast %15 : vector<1x8x4xf32> to vector<8x4xf32>
    %17 = vector.shape_cast %14 : vector<8x4xf32> to vector<1x8x4xf32>
    tpu.vector_store %arg12[%c1, %c0_7, %c0_8], %17 {strides = array<i32>} : memref<8x8x4xf32, #tpu.memory_space<vmem>>, vector<1x8x4xf32>,
    %18 = vector.extract_strided_slice %9 {offsets = [0, 8], sizes = [8, 4], strides = [1, 1]} : vector<8x32xf32> to vector<8x4xf32>
    %c2 = arith.constant 2 : index
    %c0_9 = arith.constant 0 : index
    %c0_10 = arith.constant 0 : index
    %19 = vector.load %arg12[%c2, %c0_9, %c0_10] : memref<8x8x4xf32, #tpu.memory_space<vmem>>, vector<1x8x4xf32>
    %20 = vector.shape_cast %19 : vector<1x8x4xf32> to vector<8x4xf32>
    %21 = vector.shape_cast %18 : vector<8x4xf32> to vector<1x8x4xf32>
    tpu.vector_store %arg12[%c2, %c0_9, %c0_10], %21 {strides = array<i32>} : memref<8x8x4xf32, #tpu.memory_space<vmem>>, vector<1x8x4xf32>,
    %22 = vector.extract_strided_slice %9 {offsets = [0, 12], sizes = [8, 4], strides = [1, 1]} : vector<8x32xf32> to vector<8x4xf32>
    %c3 = arith.constant 3 : index
    %c0_11 = arith.constant 0 : index
    %c0_12 = arith.constant 0 : index
    %23 = vector.load %arg12[%c3, %c0_11, %c0_12] : memref<8x8x4xf32, #tpu.memory_space<vmem>>, vector<1x8x4xf32>
    %24 = vector.shape_cast %23 : vector<1x8x4xf32> to vector<8x4xf32>
    %25 = vector.shape_cast %22 : vector<8x4xf32> to vector<1x8x4xf32>
    tpu.vector_store %arg12[%c3, %c0_11, %c0_12], %25 {strides = array<i32>} : memref<8x8x4xf32, #tpu.memory_space<vmem>>, vector<1x8x4xf32>,
    %26 = vector.extract_strided_slice %9 {offsets = [0, 16], sizes = [8, 4], strides = [1, 1]} : vector<8x32xf32> to vector<8x4xf32>
    %c4 = arith.constant 4 : index
    %c0_13 = arith.constant 0 : index
    %c0_14 = arith.constant 0 : index
    %27 = vector.load %arg12[%c4, %c0_13, %c0_14] : memref<8x8x4xf32, #tpu.memory_space<vmem>>, vector<1x8x4xf32>
    %28 = vector.shape_cast %27 : vector<1x8x4xf32> to vector<8x4xf32>
    %29 = vector.shape_cast %26 : vector<8x4xf32> to vector<1x8x4xf32>
    tpu.vector_store %arg12[%c4, %c0_13, %c0_14], %29 {strides = array<i32>} : memref<8x8x4xf32, #tpu.memory_space<vmem>>, vector<1x8x4xf32>,
    %30 = vector.extract_strided_slice %9 {offsets = [0, 20], sizes = [8, 4], strides = [1, 1]} : vector<8x32xf32> to vector<8x4xf32>
    %c5 = arith.constant 5 : index
    %c0_15 = arith.constant 0 : index
    %c0_16 = arith.constant 0 : index
    %31 = vector.load %arg12[%c5, %c0_15, %c0_16] : memref<8x8x4xf32, #tpu.memory_space<vmem>>, vector<1x8x4xf32>
    %32 = vector.shape_cast %31 : vector<1x8x4xf32> to vector<8x4xf32>
    %33 = vector.shape_cast %30 : vector<8x4xf32> to vector<1x8x4xf32>
    tpu.vector_store %arg12[%c5, %c0_15, %c0_16], %33 {strides = array<i32>} : memref<8x8x4xf32, #tpu.memory_space<vmem>>, vector<1x8x4xf32>,
    %34 = vector.extract_strided_slice %9 {offsets = [0, 24], sizes = [8, 4], strides = [1, 1]} : vector<8x32xf32> to vector<8x4xf32>
    %c6 = arith.constant 6 : index
    %c0_17 = arith.constant 0 : index
    %c0_18 = arith.constant 0 : index
    %35 = vector.load %arg12[%c6, %c0_17, %c0_18] : memref<8x8x4xf32, #tpu.memory_space<vmem>>, vector<1x8x4xf32>
    %36 = vector.shape_cast %35 : vector<1x8x4xf32> to vector<8x4xf32>
    %37 = vector.shape_cast %34 : vector<8x4xf32> to vector<1x8x4xf32>
    tpu.vector_store %arg12[%c6, %c0_17, %c0_18], %37 {strides = array<i32>} : memref<8x8x4xf32, #tpu.memory_space<vmem>>, vector<1x8x4xf32>,
    %38 = vector.extract_strided_slice %9 {offsets = [0, 28], sizes = [8, 4], strides = [1, 1]} : vector<8x32xf32> to vector<8x4xf32>
    %c7 = arith.constant 7 : index
    %c0_19 = arith.constant 0 : index
    %c0_20 = arith.constant 0 : index
    %39 = vector.load %arg12[%c7, %c0_19, %c0_20] : memref<8x8x4xf32, #tpu.memory_space<vmem>>, vector<1x8x4xf32>
    %40 = vector.shape_cast %39 : vector<1x8x4xf32> to vector<8x4xf32>
    %41 = vector.shape_cast %38 : vector<8x4xf32> to vector<1x8x4xf32>
    tpu.vector_store %arg12[%c7, %c0_19, %c0_20], %41 {strides = array<i32>} : memref<8x8x4xf32, #tpu.memory_space<vmem>>, vector<1x8x4xf32>,
    %c0_i32_21 = arith.constant 0 : i32
    %c8_i32_22 = arith.constant 8 : i32
    %42 = arith.addi %c0_i32_21, %c8_i32_22 : i32
    %c1_i32 = arith.constant 1 : i32
    scf.for %arg15 = %c0_i32_21 to %42 step %c1_i32  : i32 {
      %78 = arith.index_cast %arg15 : i32 to index
      %c0_68 = arith.constant 0 : index
      %c0_69 = arith.constant 0 : index
      %79 = vector.load %arg12[%78, %c0_68, %c0_69] : memref<8x8x4xf32, #tpu.memory_space<vmem>>, vector<1x8x4xf32>
      %80 = vector.shape_cast %79 : vector<1x8x4xf32> to vector<8x4xf32>
      %81 = arith.index_cast %arg15 : i32 to index
      %c0_70 = arith.constant 0 : index
      %c0_71 = arith.constant 0 : index
      %82 = vector.load %arg10[%81, %c0_70, %c0_71] : memref<8x8x4xf32, #tpu.memory_space<vmem>>, vector<1x8x4xf32>
      %83 = vector.shape_cast %82 : vector<1x8x4xf32> to vector<8x4xf32>
      %cst_72 = arith.constant dense<0.000000e+00> : vector<8x8xf32>
      %84 = tpu.matmul %80, %83, %cst_72 {dimension_numbers = #tpu.dot_dimension_numbers<[1], [1], [0], [0], [0, 0, 1, 0], [], []>} : vector<8x4xf32>, vector<8x4xf32>, vector<8x8xf32> -> vector<8x8xf32>
      %cst_73 = arith.constant dense<0xFF800000> : vector<8xf32>
      %85 = vector.multi_reduction <maximumf>, %84, %cst_73 [1] : vector<8x8xf32> to vector<8xf32>
      %86 = vector.shape_cast %85 : vector<8xf32> to vector<8x1xf32>
      %87 = vector.broadcast %86 : vector<8x1xf32> to vector<8x8xf32>
      %88 = arith.subf %84, %87 : vector<8x8xf32>
      %89 = math.exp %88 : vector<8x8xf32>
      %cst_74 = arith.constant dense<0.000000e+00> : vector<8xf32>
      %90 = vector.multi_reduction <add>, %89, %cst_74 [1] : vector<8x8xf32> to vector<8xf32>
      %91 = vector.shape_cast %90 : vector<8xf32> to vector<8x1xf32>
      %92 = tpu.reciprocal %91 {approx = true} : vector<8x1xf32> -> vector<8x1xf32>
      %93 = vector.broadcast %92 : vector<8x1xf32> to vector<8x8xf32>
      %94 = arith.mulf %89, %93 : vector<8x8xf32>
      %c0_75 = arith.constant 0 : index
      %95 = arith.index_cast %arg15 : i32 to index
      %c0_76 = arith.constant 0 : index
      %c0_77 = arith.constant 0 : index
      %96 = vector.load %arg9[%c0_75, %95, %c0_76, %c0_77] : memref<1x8x8x8xf32, #tpu.memory_space<vmem>>, vector<1x1x8x8xf32>
      %97 = vector.shape_cast %96 : vector<1x1x8x8xf32> to vector<8x8xf32>
      %98 = vector.shape_cast %94 : vector<8x8xf32> to vector<1x1x8x8xf32>
      tpu.vector_store %arg9[%c0_75, %95, %c0_76, %c0_77], %98 {strides = array<i32>} : memref<1x8x8x8xf32, #tpu.memory_space<vmem>>, vector<1x1x8x8xf32>,
      %99 = arith.index_cast %arg15 : i32 to index
      %c0_78 = arith.constant 0 : index
      %c0_79 = arith.constant 0 : index
      %100 = vector.load %arg11[%99, %c0_78, %c0_79] : memref<8x8x4xf32, #tpu.memory_space<vmem>>, vector<1x8x4xf32>
      %101 = vector.shape_cast %100 : vector<1x8x4xf32> to vector<8x4xf32>
      %cst_80 = arith.constant dense<0.000000e+00> : vector<8x4xf32>
      %102 = tpu.matmul %94, %101, %cst_80 {dimension_numbers = #tpu.dot_dimension_numbers<[1], [0], [0], [1], [0, 0, 1, 1], [], []>} : vector<8x8xf32>, vector<8x4xf32>, vector<8x4xf32> -> vector<8x4xf32>
      %103 = arith.index_cast %arg15 : i32 to index
      %c0_81 = arith.constant 0 : index
      %c0_82 = arith.constant 0 : index
      %104 = vector.load %arg13[%103, %c0_81, %c0_82] : memref<8x8x4xf32, #tpu.memory_space<vmem>>, vector<1x8x4xf32>
      %105 = vector.shape_cast %104 : vector<1x8x4xf32> to vector<8x4xf32>
      %106 = vector.shape_cast %102 : vector<8x4xf32> to vector<1x8x4xf32>
      tpu.vector_store %arg13[%103, %c0_81, %c0_82], %106 {strides = array<i32>} : memref<8x8x4xf32, #tpu.memory_space<vmem>>, vector<1x8x4xf32>,
    }
    %c8_i32_23 = arith.constant 8 : i32
    %c0_24 = arith.constant 0 : index
    %c0_25 = arith.constant 0 : index
    %c0_26 = arith.constant 0 : index
    %43 = vector.load %arg13[%c0_24, %c0_25, %c0_26] : memref<8x8x4xf32, #tpu.memory_space<vmem>>, vector<1x8x4xf32>
    %44 = vector.shape_cast %43 : vector<1x8x4xf32> to vector<8x4xf32>
    %c0_27 = arith.constant 0 : index
    %c0_28 = arith.constant 0 : index
    %45 = vector.load %arg14[%c0_27, %c0_28] : memref<8x32xf32, #tpu.memory_space<vmem>>, vector<8x4xf32>
    tpu.vector_store %arg14[%c0_27, %c0_28], %44 {strides = array<i32>} : memref<8x32xf32, #tpu.memory_space<vmem>>, vector<8x4xf32>,
    %c1_29 = arith.constant 1 : index
    %c0_30 = arith.constant 0 : index
    %c0_31 = arith.constant 0 : index
    %46 = vector.load %arg13[%c1_29, %c0_30, %c0_31] : memref<8x8x4xf32, #tpu.memory_space<vmem>>, vector<1x8x4xf32>
    %47 = vector.shape_cast %46 : vector<1x8x4xf32> to vector<8x4xf32>
    %c0_32 = arith.constant 0 : index
    %c4_33 = arith.constant 4 : index
    %48 = vector.load %arg14[%c0_32, %c4_33] : memref<8x32xf32, #tpu.memory_space<vmem>>, vector<8x4xf32>
    tpu.vector_store %arg14[%c0_32, %c4_33], %47 {strides = array<i32>} : memref<8x32xf32, #tpu.memory_space<vmem>>, vector<8x4xf32>,
    %c2_34 = arith.constant 2 : index
    %c0_35 = arith.constant 0 : index
    %c0_36 = arith.constant 0 : index
    %49 = vector.load %arg13[%c2_34, %c0_35, %c0_36] : memref<8x8x4xf32, #tpu.memory_space<vmem>>, vector<1x8x4xf32>
    %50 = vector.shape_cast %49 : vector<1x8x4xf32> to vector<8x4xf32>
    %c0_37 = arith.constant 0 : index
    %c8 = arith.constant 8 : index
    %51 = vector.load %arg14[%c0_37, %c8] : memref<8x32xf32, #tpu.memory_space<vmem>>, vector<8x4xf32>
    tpu.vector_store %arg14[%c0_37, %c8], %50 {strides = array<i32>} : memref<8x32xf32, #tpu.memory_space<vmem>>, vector<8x4xf32>,
    %c3_38 = arith.constant 3 : index
    %c0_39 = arith.constant 0 : index
    %c0_40 = arith.constant 0 : index
    %52 = vector.load %arg13[%c3_38, %c0_39, %c0_40] : memref<8x8x4xf32, #tpu.memory_space<vmem>>, vector<1x8x4xf32>
    %53 = vector.shape_cast %52 : vector<1x8x4xf32> to vector<8x4xf32>
    %c0_41 = arith.constant 0 : index
    %c12 = arith.constant 12 : index
    %54 = vector.load %arg14[%c0_41, %c12] : memref<8x32xf32, #tpu.memory_space<vmem>>, vector<8x4xf32>
    tpu.vector_store %arg14[%c0_41, %c12], %53 {strides = array<i32>} : memref<8x32xf32, #tpu.memory_space<vmem>>, vector<8x4xf32>,
    %c4_42 = arith.constant 4 : index
    %c0_43 = arith.constant 0 : index
    %c0_44 = arith.constant 0 : index
    %55 = vector.load %arg13[%c4_42, %c0_43, %c0_44] : memref<8x8x4xf32, #tpu.memory_space<vmem>>, vector<1x8x4xf32>
    %56 = vector.shape_cast %55 : vector<1x8x4xf32> to vector<8x4xf32>
    %c0_45 = arith.constant 0 : index
    %c16 = arith.constant 16 : index
    %57 = vector.load %arg14[%c0_45, %c16] : memref<8x32xf32, #tpu.memory_space<vmem>>, vector<8x4xf32>
    tpu.vector_store %arg14[%c0_45, %c16], %56 {strides = array<i32>} : memref<8x32xf32, #tpu.memory_space<vmem>>, vector<8x4xf32>,
    %c5_46 = arith.constant 5 : index
    %c0_47 = arith.constant 0 : index
    %c0_48 = arith.constant 0 : index
    %58 = vector.load %arg13[%c5_46, %c0_47, %c0_48] : memref<8x8x4xf32, #tpu.memory_space<vmem>>, vector<1x8x4xf32>
    %59 = vector.shape_cast %58 : vector<1x8x4xf32> to vector<8x4xf32>
    %c0_49 = arith.constant 0 : index
    %c20 = arith.constant 20 : index
    %60 = vector.load %arg14[%c0_49, %c20] : memref<8x32xf32, #tpu.memory_space<vmem>>, vector<8x4xf32>
    tpu.vector_store %arg14[%c0_49, %c20], %59 {strides = array<i32>} : memref<8x32xf32, #tpu.memory_space<vmem>>, vector<8x4xf32>,
    %c6_50 = arith.constant 6 : index
    %c0_51 = arith.constant 0 : index
    %c0_52 = arith.constant 0 : index
    %61 = vector.load %arg13[%c6_50, %c0_51, %c0_52] : memref<8x8x4xf32, #tpu.memory_space<vmem>>, vector<1x8x4xf32>
    %62 = vector.shape_cast %61 : vector<1x8x4xf32> to vector<8x4xf32>
    %c0_53 = arith.constant 0 : index
    %c24 = arith.constant 24 : index
    %63 = vector.load %arg14[%c0_53, %c24] : memref<8x32xf32, #tpu.memory_space<vmem>>, vector<8x4xf32>
    tpu.vector_store %arg14[%c0_53, %c24], %62 {strides = array<i32>} : memref<8x32xf32, #tpu.memory_space<vmem>>, vector<8x4xf32>,
    %c7_54 = arith.constant 7 : index
    %c0_55 = arith.constant 0 : index
    %c0_56 = arith.constant 0 : index
    %64 = vector.load %arg13[%c7_54, %c0_55, %c0_56] : memref<8x8x4xf32, #tpu.memory_space<vmem>>, vector<1x8x4xf32>
    %65 = vector.shape_cast %64 : vector<1x8x4xf32> to vector<8x4xf32>
    %c0_57 = arith.constant 0 : index
    %c28 = arith.constant 28 : index
    %66 = vector.load %arg14[%c0_57, %c28] : memref<8x32xf32, #tpu.memory_space<vmem>>, vector<8x4xf32>
    tpu.vector_store %arg14[%c0_57, %c28], %65 {strides = array<i32>} : memref<8x32xf32, #tpu.memory_space<vmem>>, vector<8x4xf32>,
    %c0_58 = arith.constant 0 : index
    %c0_59 = arith.constant 0 : index
    %67 = vector.load %arg14[%c0_58, %c0_59] : memref<8x32xf32, #tpu.memory_space<vmem>>, vector<8x32xf32>
    %c0_60 = arith.constant 0 : index
    %c0_61 = arith.constant 0 : index
    %68 = vector.load %arg6[%c0_60, %c0_61] : memref<32x32xf32, #tpu.memory_space<vmem>>, vector<32x32xf32>
    %cst_62 = arith.constant dense<0.000000e+00> : vector<8x32xf32>
    %69 = tpu.matmul %67, %68, %cst_62 {dimension_numbers = #tpu.dot_dimension_numbers<[1], [0], [0], [1], [0, 0, 1, 1], [], []>} : vector<8x32xf32>, vector<32x32xf32>, vector<8x32xf32> -> vector<8x32xf32>
    %c0_63 = arith.constant 0 : index
    %c0_64 = arith.constant 0 : index
    %70 = vector.load %arg7[%c0_63, %c0_64] : memref<1x32xf32, #tpu.memory_space<vmem>>, vector<1x32xf32>
    %71 = vector.shape_cast %70 : vector<1x32xf32> to vector<32xf32>
    %72 = vector.shape_cast %71 : vector<32xf32> to vector<1x32xf32>
    %73 = vector.broadcast %72 : vector<1x32xf32> to vector<8x32xf32>
    %74 = arith.addf %69, %73 : vector<8x32xf32>
    %c0_65 = arith.constant 0 : index
    %c0_66 = arith.constant 0 : index
    %c0_67 = arith.constant 0 : index
    %75 = vector.load %arg8[%c0_65, %c0_66, %c0_67] : memref<1x8x32xf32, #tpu.memory_space<vmem>>, vector<1x8x32xf32>
    %76 = vector.shape_cast %75 : vector<1x8x32xf32> to vector<8x32xf32>
    %77 = vector.shape_cast %74 : vector<8x32xf32> to vector<1x8x32xf32>
    tpu.vector_store %arg8[%c0_65, %c0_66, %c0_67], %77 {strides = array<i32>} : memref<1x8x32xf32, #tpu.memory_space<vmem>>, vector<1x8x32xf32>,
    return
  }
  func.func @transform_0(%arg0: i32, %arg1: i32) -> (i32, i32, i32) {
    %c0_i32 = arith.constant 0 : i32
    %c0_i32_0 = arith.constant 0 : i32
    %c0_i32_1 = arith.constant 0 : i32
    return %arg0, %c0_i32, %c0_i32_0 : i32, i32, i32
  }
  func.func @transform_1(%arg0: i32, %arg1: i32) -> (i32, i32) {
    %c0_i32 = arith.constant 0 : i32
    %c0_i32_0 = arith.constant 0 : i32
    %c0_i32_1 = arith.constant 0 : i32
    return %c0_i32, %c0_i32_0 : i32, i32
  }
  func.func @transform_2(%arg0: i32, %arg1: i32) -> (i32, i32) {
    %c0_i32 = arith.constant 0 : i32
    %c0_i32_0 = arith.constant 0 : i32
    %c0_i32_1 = arith.constant 0 : i32
    return %c0_i32, %c0_i32_0 : i32, i32
  }
  func.func @transform_3(%arg0: i32, %arg1: i32) -> (i32, i32) {
    %c0_i32 = arith.constant 0 : i32
    %c0_i32_0 = arith.constant 0 : i32
    %c0_i32_1 = arith.constant 0 : i32
    return %c0_i32, %c0_i32_0 : i32, i32
  }
  func.func @transform_4(%arg0: i32, %arg1: i32) -> (i32, i32) {
    %c0_i32 = arith.constant 0 : i32
    %c0_i32_0 = arith.constant 0 : i32
    %c0_i32_1 = arith.constant 0 : i32
    return %c0_i32, %c0_i32_0 : i32, i32
  }
  func.func @transform_5(%arg0: i32, %arg1: i32) -> (i32, i32) {
    %c0_i32 = arith.constant 0 : i32
    %c0_i32_0 = arith.constant 0 : i32
    %c0_i32_1 = arith.constant 0 : i32
    return %c0_i32, %c0_i32_0 : i32, i32
  }
  func.func @transform_6(%arg0: i32, %arg1: i32) -> (i32, i32, i32) {
    %c0_i32 = arith.constant 0 : i32
    %c0_i32_0 = arith.constant 0 : i32
    return %arg0, %arg1, %c0_i32 : i32, i32, i32
  }
  func.func @transform_7(%arg0: i32, %arg1: i32) -> (i32, i32, i32, i32) {
    %c0_i32 = arith.constant 0 : i32
    %c0_i32_0 = arith.constant 0 : i32
    %c0_i32_1 = arith.constant 0 : i32
    return %arg0, %c0_i32, %arg1, %c0_i32_0 : i32, i32, i32, i32
  }
}

</mosaic_0001>

<bundles_post_ra>
// kernel: tpu_custom_call.1
= control target key start
LH: loop header
LB: loop body
LE: loop exit
PB: predicated region body
PF: predicated region fallthrough
CT: control target
= control target key end

     0   :  { %s1740_s0 = inlined_call_operand.hbm [shape: f32[2,8,32], index: 0, kind: input, shape index: {}]   ;;  %s1741_s1 = inlined_call_operand.hbm [shape: f32[32,32], index: 1, kind: input, shape index: {}]   ;;  %s1742_s2 = inlined_call_operand.hbm [shape: f32[32,32], index: 2, kind: input, shape index: {}]   ;;  %s1743_s3 = inlined_call_operand.hbm [shape: f32[32,32], index: 3, kind: input, shape index: {}]   ;;  %s1744_s4 = inlined_call_operand.hbm [shape: f32[32,32], index: 4, kind: input, shape index: {}]   ;;  %s1745_s5 = inlined_call_operand.vmem [shape: f32[1,32], index: 5, kind: input, shape index: {}]   ;;  %s1746_s6 = inlined_call_operand.hbm [shape: f32[2,8,32], index: 6, kind: output, shape index: {0}]   ;;  %s1747_s7 = inlined_call_operand.hbm [shape: f32[2,8,8,8], index: 7, kind: output, shape index: {1}]  }
   0x1   :  { %1749 = sst [smem:[#allocation24_spill]] %s1740_s0 }
   0x2   :  { %1750 = sst [smem:[#allocation25_spill]] %s1741_s1 }
   0x3   :  { %1751 = sst [smem:[#allocation26_spill]] %s1742_s2 }
   0x4   :  { %13 = vsyncpa [#allocation8], 0 }
   0x5   :  { %15 = vsyncpa [#allocation8 + $0x1], 0 }
   0x6   :  { %16 = vsyncpa [#allocation11], 0 }
   0x7   :  { %17 = vsyncpa [#allocation14], 0 }
   0x8   :  { %18 = vsyncpa [#allocation9], 0 }
   0x9   :  { %20 = vsyncpa [#allocation9 + $0x1], 0 }
   0xa   :  { %21 = vsyncpa [#allocation18], 0 }
   0xb   :  { %23 = vsyncpa [#allocation18 + $0x1], 0  ;;  %s1483_s24 = smov 0   ;;  %s1485_s25 = smov 0  }
   0xc   :  { %s1487_s26 = smov 0   ;;  %s1489_s27 = smov 0  }
   0xd   :  { %s1491_s28 = smov 0   ;;  %s1493_s29 = smov 0  }
   0xe LB: > { %s968_s30 = sadd.s32 4294967295, %s1416_s29   ;;  %p970_p0 = scmp.ge.s32.totalorder %s1416_s29, 1  ;;  %s1416_s29 = sphi %s1493_s29, %s29_s29   ;;  %s1412_s28 = sphi %s1491_s28, %s1766_s28   ;;  %s1408_s27 = sphi %s1489_s27, %s1765_s27   ;;  %s1404_s26 = sphi %s1487_s26, %s1764_s26   ;;  %s1400_s25 = sphi %s1485_s25, %s1763_s25   ;;  %s1396_s24 = sphi %s1483_s24, %s1762_s24  }
   0xf   : > { %p1517_p1 = scmp.eq.s32.totalorder %s968_s30, 0  ;;  %p233_p2 = scmp.lt.s32.totalorder %s1416_s29, 3 }
  0x10   : > { %s1753_s1 = sld [smem:[#allocation25_spill]]  ;;  %s1422_s13 = smov [#allocation10]  }
  0x11   : > { %p1525_p3 = pnand %p970_p0, %p233_p2  ;;  %s246_s14 = sshll.u32 %s1422_s13, 4  ;;  %s247_s14 = int_to_ptr.vmem [resolvable:$true] %s246_s14 }
  0x12   : > { %p975_p6 = scmp.ge.s32.totalorder %s1416_s29, 2  ;;  %s272_s18 = sshll.u32 %s1743_s3, 4  ;;  %s273_s18 = int_to_ptr.hbm [resolvable:$true] %s272_s18 }
  0x13   : > { %p1024_p4 = pneg %p1525_p3  ;;  %s1423_s19 = smov 128  }
  0x14   : > { %s1424_s20 = smov 8   ;;  %s1425_s21 = smov [#allocation13]  }
  0x15   : > { %p1533_p5 = pnand %p1024_p4, %p1517_p1  ;;  %s274_s22 = sshll.u32 %s1425_s21, 4  ;;  %s275_s22 = int_to_ptr.vmem [resolvable:$true] %s274_s22 }
  0x16   : > { %s244_s11 = sshll.u32 %s1753_s1, 4  ;;  %s1756_s2 = sld [smem:[#allocation26_spill]]  ;;  %s245_s11 = int_to_ptr.hbm [resolvable:$true] %s244_s11 }
  0x17   : > { %1027 = dma.hbm_to_vmem [thread:$0]  (!%p1533_p5), %s245_s11, 512, %s247_s14, [#allocation11], %s1423_s19, %s1423_s19, %s1424_s20  }
  0x18   : > { %1033 = dma.hbm_to_vmem [thread:$0]  (!%p1533_p5), %s273_s18, 512, %s275_s22, [#allocation14], %s1423_s19, %s1423_s19, %s1424_s20  }
  0x19   : > { %s286_s11 = sshll.u32 %s1744_s4, 4  ;;  %s1426_s14 = smov [#allocation12]   ;;  %s287_s11 = int_to_ptr.hbm [resolvable:$true] %s286_s11 }
  0x1a   : > { %s260_s17 = sshll.u32 %s1426_s14, 4  ;;  %s1427_s21 = smov [#allocation15]   ;;  %s261_s17 = int_to_ptr.vmem [resolvable:$true] %s260_s17 }
  0x1b   : > { %s288_s23 = sshll.u32 %s1427_s21, 4  ;;  %s41_s18 = sadd.s32 1, %s1412_s28  ;;  %s289_s23 = int_to_ptr.vmem [resolvable:$true] %s288_s23 }
  0x1c   : > { %s258_s10 = sshll.u32 %s1756_s2, 4  ;;  %s969_s22 = sadd.s32 4294967294, %s1416_s29   ;;  %s259_s10 = int_to_ptr.hbm [resolvable:$true] %s258_s10 }
  0x1d   : > { %1030 = dma.hbm_to_vmem [thread:$0]  (!%p1533_p5), %s259_s10, 512, %s261_s17, [#allocation11], %s1423_s19, %s1423_s19, %s1424_s20  }
  0x1e   : > { %1036 = dma.hbm_to_vmem [thread:$0]  (!%p1533_p5), %s287_s11, 512, %s289_s23, [#allocation14], %s1423_s19, %s1423_s19, %s1424_s20  }
  0x1f   : > { %p43_p7 = scmp.ge.s32.totalorder %s41_s18, 2  ;;  %s48_s9 = sadd.s32 1, %s1404_s26 }
  0x20   : > { %p55_p8 = scmp.ne.s32.totalorder %s1404_s26, %s1400_s25  ;;  %p56_p9 = scmp.eq.s32.totalorder %s1416_s29, 0 }
  0x21   : > { %s1768_s18 = smov (%p43_p7, %s41_s18), 0  ;;  %p61_p10 = scmp.ne.s32.totalorder %s1400_s25, %s1396_s24 }
  0x22   : > { %s45_s10 = ssub.s32 %s1412_s28, %s1768_s18  ;;  %p192_p11 = scmp.eq.s32.totalorder %s968_s30, 1 }
  0x23   : > { %p46_p12 = scmp.eq.s32.totalorder %s45_s10, 0  ;;  %p1571_p13 = por %p1517_p1, %p61_p10 }
  0x24   : > { %p1575_p0 = por %p192_p11, %p55_p8  ;;  %p198_p2 = scmp.eq.s32.totalorder %s969_s22, 1 }
  0x25   : > { %s1580_s20 = scalar_select %p46_p12, %s1404_s26, %s48_s9  }
  0x26   : > { %p57_p4 = por %p56_p9, %p55_p8  ;;  %p1582_p5 = por %p198_p2, %p61_p10 }
  0x27   : > { %s305_s16 = sand.u32 1, %s1404_s26   ;;  %s977_s30 = sshll.u32 %s1412_s28, 3 }
  0x28   : > { %p1052_p7 = scmp.lt.s32.totalorder %s1416_s29, 2  ;;  %s976_s11 = sshll.u32 %s305_s16, 3 }
  0x29   : > { %s1760_s0 = sld [smem:[#allocation24_spill]]  ;;  %s309_s10 = scalar_lea.vmem [#allocation7], %s976_s11 }
  0x2a   : > { %s317_s1 = sshll.u32 %s309_s10, 4  ;;  %p1038_p11 = pnand %p1052_p7, %p57_p4  ;;  %s318_s1 = int_to_ptr.vmem [resolvable:$true] %s317_s1 }
  0x2b   : > { %s306_s22 = scalar_lea.sflag [#allocation8], %s305_s16  ;;  %s1595_s9 = sand.u32 (!%p1525_p3), 1, %s1400_s25  }
  0x2c   : > { %s979_s14 = sshll.u32 (!%p1525_p3), %s1595_s9, 3 }
  0x2d   : > { %326 = sbr.rel (%p1525_p3) target bundleno = 1145 (0x479), region = 44  ;;  %s332_s11 = scalar_lea.vmem (!%p1525_p3), [#allocation7], %s979_s14 }
  0x2f   : > { %s313_s21 = scalar_lea.hbm %s1760_s0, %s977_s30  ;;  %s329_s30 = scalar_lea.sflag (!%p1525_p3), [#allocation8], %s1595_s9 }
  0x30   : > { %s315_s23 = sshll.u32 %s313_s21, 4  ;;  %s316_s23 = int_to_ptr.hbm [resolvable:$true] %s315_s23 }
  0x31   : > { %1040 = dma.hbm_to_vmem [thread:$0]  (!%p1038_p11), %s316_s23, 128, %s318_s1, %s306_s22  }
  0x32   : > { %1375 = dma.done.wait (%p1571_p13), %s329_s30, 128  }
  0x33   : > { %1377 = vsyncadd (%p1571_p13), %s329_s30, 4294967168 }
  0x34   : > { %1379 = dma.done.wait (%p1517_p1), [#allocation11], 1024  }
  0x35   : > { %1381 = vsyncadd (%p1517_p1), [#allocation11], 4294966272 }
  0x36   : > { %1383 = dma.done.wait (%p1517_p1), [#allocation14], 1024  }
  0x37   : > { %1385 = vsyncadd (%p1517_p1), [#allocation14], 4294966272  ;;  %s985_s1 = sshll.u32 %s1595_s9, 6  ;;  %v397_v0 = vld [vmem:[#allocation12 + $0x18] sm:$0xff]  ;;  %v396_v1 = vld [vmem:[#allocation12 + $0x10] sm:$0xff]  ;;  %vm398_vm0 = vcmask 261120  }
  0x38   : > { %414 = vmatpush.msra.mxu0 %v397_v0  ;;  %v463_v2 = vld [vmem:[#allocation13 + $0x18] sm:$0xff]  ;;  %v395_v3 = vld [vmem:[#allocation12 + $0x8] sm:$0xff]  ;;  %v462_v4 = vld [vmem:[#allocation13 + $0x10] sm:$0xff]  ;;  %vm422_vm1 = vcmask 31744   ;;  %s1428_s8 = smov 108   ;;  %s1429_s12 = smov 116  }
  0x39   : > { %476 = vmatpush.msra.mxu1 %v463_v2  ;;  %v461_v5 = vld [vmem:[#allocation13 + $0x8] sm:$0xff]  ;;  %v527_v6 = vld [vmem:[#allocation10 + $0x18] sm:$0xff]  ;;  %v526_v7 = vld [vmem:[#allocation10 + $0x10] sm:$0xff]  ;;  %s1430_s15 = smov 124   ;;  %s1431_s16 = smov 104  }
  0x3a   : > { %415 = vmatpush.msra.mxu0 %v396_v1  ;;  %v394_v8 = vld [vmem:[#allocation12] sm:$0xff]  ;;  %544 = vmatpush.msra.mxu2 %v527_v6  ;;  %v393_v9 = vld [vmem:[%s332_s11] sm:$0xff]  ;;  %v525_v11 = vld [vmem:[#allocation10 + $0x8] sm:$0xff]  ;;  %s1432_s17 = smov 112   ;;  %s1433_s21 = smov 120  }
  0x3b   : > { %477 = vmatpush.msra.mxu1 %v462_v4  ;;  %v460_v10 = vld [vmem:[#allocation13] sm:$0xff]  ;;  %s1434_s23 = smov 100   ;;  %s1646_s10 = scalar_lea.vmem [#allocation16], %s979_s14 }
  0x3c   : > { %416 = vmatpush.msra.mxu0 %v395_v3  ;;  %545 = vmatpush.msra.mxu2 %v526_v7  ;;  %v524_v12 = vld [vmem:[#allocation10] sm:$0xff]  ;;  %s1650_s22 = scalar_lea.vmem [#allocation17], %s985_s1  ;;  %s1652_s30 = smov 0  }
  0x3d   : > { %478 = vmatpush.msra.mxu1 %v461_v5 }
  0x3e   : > { %417 = vmatpush.msra.mxu0 %v394_v8  ;;  %546 = vmatpush.msra.mxu2 %v525_v11 }
  0x3f   : > { %986 = vmatmul.msk.f32.vlgmr.msra.gmra.mxu0 %vm398_vm0, %v393_v9  ;;  %479 = vmatpush.msra.mxu1 %v460_v10 }
  0x40   : > { %987 = vmatmul.msk.f32.vlgmr.msra.gmra.mxu1 %vm398_vm0, %v393_v9  ;;  %547 = vmatpush.msra.mxu2 %v524_v12 }
  0x41   : > { %988 = vmatmul.msk.f32.vlgmr.msra.gmra.mxu2 %vm398_vm0, %v393_v9 }
  0xbc   : > { %v419_v13 = vpop.f32.mrf.mxu0 }
  0xbd   : > { %423 = vst.msk [vmem:[#allocation2] sm:$0xff] %vm422_vm1, %v419_v13  ;;  %445 = vrot.lane.b32.xlu2 %v419_v13, %s1428_s8  ;;  %435 = vrot.lane.b32.xlu1 %v419_v13, %s1429_s12  ;;  %v481_v14 = vpop.f32.mrf.mxu1 }
  0xbe   : > { %425 = vrot.lane.b32.xlu0 %v419_v13, %s1430_s15  ;;  %484 = vst.msk [vmem:[#allocation3] sm:$0xff] %vm422_vm1, %v481_v14 }
  0xc4   : > { %v549_v15 = vpop.f32.mrf.mxu2 }
  0xc5   : > { %450 = vrot.lane.b32.xlu2 %v419_v13, %s1431_s16  ;;  %440 = vrot.lane.b32.xlu1 %v419_v13, %s1432_s17  ;;  %553 = vst.msk [vmem:[#allocation4] sm:$0xff] %vm422_vm1, %v549_v15 }
  0xc6   : > { %430 = vrot.lane.b32.xlu0 %v419_v13, %s1433_s21 }
  0xcd   : > { %491 = vrot.lane.b32.xlu2 %v481_v14, %s1433_s21  ;;  %486 = vrot.lane.b32.xlu1 %v481_v14, %s1430_s15 }
  0xce   : > { %455 = vrot.lane.b32.xlu0 %v419_v13, %s1434_s23 }
  0xd5   : > { %506 = vrot.lane.b32.xlu2 %v481_v14, %s1428_s8  ;;  %501 = vrot.lane.b32.xlu1 %v481_v14, %s1432_s17 }
  0xd6   : > { %496 = vrot.lane.b32.xlu0 %v481_v14, %s1429_s12 }
  0xdd   : > { %555 = vrot.lane.b32.xlu2 %v549_v15, %s1430_s15  ;;  %516 = vrot.lane.b32.xlu1 %v481_v14, %s1434_s23 }
  0xde   : > { %511 = vrot.lane.b32.xlu0 %v481_v14, %s1431_s16 }
  0xe5   : > { %570 = vrot.lane.b32.xlu2 %v549_v15, %s1432_s17  ;;  %565 = vrot.lane.b32.xlu1 %v549_v15, %s1429_s12 }
  0xe6   : > { %560 = vrot.lane.b32.xlu0 %v549_v15, %s1433_s21 }
  0xed   : > { %585 = vrot.lane.b32.xlu2 %v549_v15, %s1434_s23  ;;  %580 = vrot.lane.b32.xlu1 %v549_v15, %s1431_s16 }
  0xee   : > { %575 = vrot.lane.b32.xlu0 %v549_v15, %s1428_s8 }
 0x117   : > { %v446_v16 = vpop.permute.xlu2 %445 }
 0x118   : > { %449 = vst.msk [vmem:[#allocation2 + $0x28] sm:$0xff] %vm422_vm1, %v446_v16 }
 0x11f   : > { %v451_v17 = vpop.permute.xlu2 %450 }
 0x120   : > { %454 = vst.msk [vmem:[#allocation2 + $0x30] sm:$0xff] %vm422_vm1, %v451_v17 }
 0x127   : > { %v492_v18 = vpop.permute.xlu2 %491 }
 0x128   : > { %495 = vst.msk [vmem:[#allocation3 + $0x10] sm:$0xff] %vm422_vm1, %v492_v18 }
 0x12f   : > { %v507_v19 = vpop.permute.xlu2 %506  ;;  %v436_v20 = vpop.permute.xlu1 %435 }
 0x130   : > { %510 = vst.msk [vmem:[#allocation3 + $0x28] sm:$0xff] %vm422_vm1, %v507_v19  ;;  %v426_v21 = vpop.permute.xlu0 %425 }
 0x131   : > { %439 = vst.msk [vmem:[#allocation2 + $0x18] sm:$0xff] %vm422_vm1, %v436_v20 }
 0x132   : > { %429 = vst.msk [vmem:[#allocation2 + $0x8] sm:$0xff] %vm422_vm1, %v426_v21 }
 0x137   : > { %v556_v22 = vpop.permute.xlu2 %555  ;;  %v441_v23 = vpop.permute.xlu1 %440 }
 0x138   : > { %559 = vst.msk [vmem:[#allocation4 + $0x8] sm:$0xff] %vm422_vm1, %v556_v22  ;;  %v431_v24 = vpop.permute.xlu0 %430 }
 0x139   : > { %444 = vst.msk [vmem:[#allocation2 + $0x20] sm:$0xff] %vm422_vm1, %v441_v23 }
 0x13a   : > { %434 = vst.msk [vmem:[#allocation2 + $0x10] sm:$0xff] %vm422_vm1, %v431_v24 }
 0x13f   : > { %v571_v25 = vpop.permute.xlu2 %570  ;;  %v487_v26 = vpop.permute.xlu1 %486 }
 0x140   : > { %574 = vst.msk [vmem:[#allocation4 + $0x20] sm:$0xff] %vm422_vm1, %v571_v25  ;;  %v456_v27 = vpop.permute.xlu0 %455 }
 0x141   : > { %490 = vst.msk [vmem:[#allocation3 + $0x8] sm:$0xff] %vm422_vm1, %v487_v26 }
 0x142   : > { %459 = vst.msk [vmem:[#allocation2 + $0x38] sm:$0xff] %vm422_vm1, %v456_v27 }
 0x147   : > { %v586_v28 = vpop.permute.xlu2 %585  ;;  %v502_v29 = vpop.permute.xlu1 %501 }
 0x148   : > { %589 = vst.msk [vmem:[#allocation4 + $0x38] sm:$0xff] %vm422_vm1, %v586_v28  ;;  %v497_v30 = vpop.permute.xlu0 %496 }
 0x149   : > { %505 = vst.msk [vmem:[#allocation3 + $0x20] sm:$0xff] %vm422_vm1, %v502_v29 }
 0x14a   : > { %500 = vst.msk [vmem:[#allocation3 + $0x18] sm:$0xff] %vm422_vm1, %v497_v30 }
 0x14f   : > { %v517_v31 = vpop.permute.xlu1 %516 }
 0x150   : > { %520 = vst.msk [vmem:[#allocation3 + $0x38] sm:$0xff] %vm422_vm1, %v517_v31  ;;  %v512_v32 = vpop.permute.xlu0 %511 }
 0x151   : > { %515 = vst.msk [vmem:[#allocation3 + $0x30] sm:$0xff] %vm422_vm1, %v512_v32 }
 0x157   : > { %v566_v33 = vpop.permute.xlu1 %565 }
 0x158   : > { %569 = vst.msk [vmem:[#allocation4 + $0x18] sm:$0xff] %vm422_vm1, %v566_v33  ;;  %v561_v34 = vpop.permute.xlu0 %560 }
 0x159   : > { %564 = vst.msk [vmem:[#allocation4 + $0x10] sm:$0xff] %vm422_vm1, %v561_v34 }
 0x15f   : > { %v581_v35 = vpop.permute.xlu1 %580 }
 0x160   : > { %584 = vst.msk [vmem:[#allocation4 + $0x30] sm:$0xff] %vm422_vm1, %v581_v35  ;;  %v576_v36 = vpop.permute.xlu0 %575 }
 0x161   : > { %579 = vst.msk [vmem:[#allocation4 + $0x28] sm:$0xff] %vm422_vm1, %v576_v36 }
 0x162 LB: >> { %s1658_s11 = sshll.u32 %s1420_s30, 3  ;;  %vm627_vm2 = vcmask 64512   ;;  %s595_s30 = sadd.s32 1, %s1420_s30   ;;  %s1420_s30 = sphi %s1652_s30, %s595_s30  }
 0x163   : >> { %s599_s8 = scalar_lea.vmem [#allocation2], %s1658_s11  ;;  %s597_s14 = scalar_lea.vmem [#allocation4], %s1658_s11 }
 0x164   : >> { %v600_v37 = vld [vmem:[%s599_s8] sm:$0xff]  ;;  %s641_s1 = scalar_lea.vmem [#allocation3], %s1658_s11  ;;  %s639_s12 = scalar_lea.vmem %s1650_s22, %s1658_s11 [#allocation17] }
 0x165   : >> { %990 = vmatpush.xpose.msk.msra.mxu0 %vm422_vm1, %v600_v37  ;;  %v642_v46 = vld [vmem:[%s641_s1] sm:$0xff]  ;;  %s666_s15 = scalar_lea.vmem [#allocation5], %s1658_s11  ;;  %p592_p1 = scmp.ge.s32.totalorder %s595_s30, 8  }
 0x166   : >> { %661 = vmatpush.msra.mxu1 %v642_v46  ;;  %s1435_s16 = smov (%p592_p1), 4   ;;  %s1436_s17 = smov (%p592_p1), 12   ;;  %v730_v59 = vld [vmem:[#allocation15 + $0x18] sm:$0xff] (%p592_p1)  ;;  %v729_v60 = vld [vmem:[#allocation15 + $0x10] sm:$0xff] (%p592_p1)  ;;  %v728_v61 = vld [vmem:[#allocation15 + $0x8] sm:$0xff] (%p592_p1)  ;;  %vm676_vm3 = vcmask (%p592_p1), 64544  }
 0x167   : > { %s1437_s21 = smov (%p592_p1), 20   ;;  %s1748_s23 = smov (%p592_p1), 8   ;;  %v727_v62 = vld [vmem:[#allocation15] sm:$0xff] (%p592_p1)  ;;  %vm684_vm4 = vcmask (%p592_p1), 97344   ;;  %vm692_vm5 = vcmask (%p592_p1), 130144   ;;  %vm700_vm6 = vcmask (%p592_p1), 162944  }
 0x168   : >> { %v598_v38 = vld [vmem:[%s597_s14] sm:$0xff]  ;;  %s1439_s11 = smov (%p592_p1), 16   ;;  %s1440_s8 = smov (%p592_p1), 24   ;;  %vm708_vm7 = vcmask (%p592_p1), 195744   ;;  %vm716_vm8 = vcmask (%p592_p1), 228544   ;;  %vm724_vm9 = vcmask (%p592_p1), 261344  }
 0x169   : >> { %991 = vmatmul.msk.f32.vlgmr.msra.gmra.mxu0 %vm422_vm1, %v598_v38  ;;  %s1441_s30 = smov (%p592_p1), 28   ;;  %s1001_s14 = sshll.u32 (%p592_p1), %s1408_s27, 6 }
 0x16a   : > { %750 = vmatpush.msra.mxu0 (%p592_p1), %v730_v59  ;;  %s1310_s0 = scalar_lea.hbm (%p592_p1), %s1747_s7, 128 }
 0x16c   : > { %751 = vmatpush.msra.mxu0 (%p592_p1), %v729_v60 }
 0x16e   : > { %752 = vmatpush.msra.mxu0 (%p592_p1), %v728_v61 }
 0x170   : > { %753 = vmatpush.msra.mxu0 (%p592_p1), %v727_v62 }
 0x1e6   : >> { %v624_v39 = vpop.f32.mrf.mxu0 }
 0x1e7   : >> { %v628_v40 = vsel %vm627_vm2, %v624_v39, -inf }
 0x1e8   : >> { %629 = vmax.xlane.f32.xlu0 %v628_v40 }
 0x25b   : >> { %v630_v41 = vpop.xlane.xlu0 %629 }
 0x25c   : >> { %v631_v42 = vsub.f32 %v624_v39, %v630_v41 }
 0x25e   : >> { %v632_v43 = vmul.f32 1.442695, %v631_v42 }
 0x260   : >> { %1135 = vpow2.f32 %v632_v43 }
 0x266   : >> { %v1136_v44 = vpop.eup %1135 }
 0x267   : >> { %v634_v45 = vsel %vm627_vm2, %v1136_v44, 0.0 }
 0x268   : >> { %635 = vadd.xlane.f32.xlu0 %v634_v45 }
 0x2db   : >> { %v636_v47 = vpop.xlane.xlu0 %635 }
 0x2dc   : >> { %1137 = vrcp.f32 %v636_v47 }
 0x2e2   : >> { %v1138_v48 = vpop.eup %1137 }
 0x2e3   : >> { %v638_v49 = vmul.f32 %v1138_v48, %v1136_v44 }
 0x2e5   : >> { %640 = vst.msk [vmem:[%s639_s12] sm:$0xff] %vm627_vm2, %v638_v49  ;;  %992 = vmatmul.msk.f32.vlgmr.msra.gmra.mxu1 %vm627_vm2, %v638_v49 }
 0x35f   : > { %594 = sbr.rel (!%p592_p1) target bundleno = 354 (0x162), region = 167 }
 0x362   : >> { %v663_v50 = vpop.f32.mrf.mxu1 }
 0x363   : >> { %667 = vst.msk [vmem:[%s666_s15] sm:$0xff] %vm422_vm1, %v663_v50  ;;  %s792_s15 = scalar_lea.hbm (%p592_p1), %s1747_s7, %s1001_s14 }
 0x36a   : > { %v671_v51 = vld [vmem:[#allocation5 + $0x8] sm:$0xff]  ;;  %v687_v52 = vld [vmem:[#allocation5 + $0x18] sm:$0xff]  ;;  %v679_v54 = vld [vmem:[#allocation5 + $0x10] sm:$0xff] }
 0x36b   : > { %673 = vrot.lane.b32.xlu0 %v671_v51, %s1435_s16  ;;  %689 = vrot.lane.b32.xlu1 %v687_v52, %s1436_s17  ;;  %v703_v53 = vld [vmem:[#allocation5 + $0x28] sm:$0xff]  ;;  %v695_v55 = vld [vmem:[#allocation5 + $0x20] sm:$0xff]  ;;  %v711_v56 = vld [vmem:[#allocation5 + $0x30] sm:$0xff]  ;;  %s793_s16 = sshll.u32 %s1650_s22, 4  ;;  %s795_s17 = sshll.u32 %s792_s15, 4  ;;  %s794_s16 = int_to_ptr.vmem [resolvable:$true] %s793_s16  ;;  %s796_s17 = int_to_ptr.hbm [resolvable:$true] %s795_s17 }
 0x36c   : > { %705 = vrot.lane.b32.xlu2 %v703_v53, %s1437_s21  ;;  %v719_v57 = vld [vmem:[#allocation5 + $0x38] sm:$0xff]  ;;  %v668_v58 = vld [vmem:[#allocation5] sm:$0xff]  ;;  %s765_s21 = scalar_lea.sflag [#allocation18], %s1595_s9 }
 0x36d   : > { %669 = vst.msk [vmem:[#allocation6] sm:$0xff] %vm422_vm1, %v668_v58 }
 0x373   : > { %681 = vrot.lane.b32.xlu0 %v679_v54, %s1748_s23  ;;  %697 = vrot.lane.b32.xlu1 %v695_v55, %s1439_s11  ;;  %s1304_s11 = sshra.s32 %s796_s17, 4  ;;  %s1305_s11 = int_to_ptr.hbm [resolvable:$true] %s1304_s11 }
 0x374   : > { %713 = vrot.lane.b32.xlu2 %v711_v56, %s1440_s8  ;;  %s1306_s8 = scalar_lea.hbm %s1305_s11, 64  ;;  %p1311_p10 = scmp.lt.s32.totalorder %s1305_s11, %s1747_s7 }
 0x375   : > { %p1307_p3 = scmp.ne.s32.totalorder %s1305_s11, %s1306_s8  ;;  %p1312_p12 = scmp.lt.s32.totalorder %s1310_s0, %s1306_s8 }
 0x377   : > { %p1308_p8 = pnand %p1307_p3, %p1575_p0  ;;  %p1313_p13 = por %p1312_p12, %p1311_p10 }
 0x379   : > { %p1309_p9 = pneg %p1308_p8 }
 0x37b   : > { %721 = vrot.lane.b32.xlu0 %v719_v57, %s1441_s30  ;;  %p1314_p2 = pnand %p1313_p13, %p1309_p9 }
 0x3c6   : > { %v706_v63 = vpop.permute.xlu2 %705 }
 0x3ce   : > { %v714_v4 = vpop.permute.xlu2 %713 }
 0x3dd   : > { %v674_v0 = vpop.permute.xlu0 %673  ;;  %v690_v1 = vpop.permute.xlu1 %689 }
 0x3de   : > { %677 = vst.msk [vmem:[#allocation6] sm:$0xff] %vm676_vm3, %v674_v0 }
 0x3e5   : > { %v682_v2 = vpop.permute.xlu0 %681  ;;  %v698_v3 = vpop.permute.xlu1 %697 }
 0x3e6   : > { %685 = vst.msk [vmem:[#allocation6] sm:$0xff] %vm684_vm4, %v682_v2 }
 0x3e7   : > { %693 = vst.msk [vmem:[#allocation6] sm:$0xff] %vm692_vm5, %v690_v1 }
 0x3e8   : > { %701 = vst.msk [vmem:[#allocation6] sm:$0xff] %vm700_vm6, %v698_v3 }
 0x3e9   : > { %709 = vst.msk [vmem:[#allocation6] sm:$0xff] %vm708_vm7, %v706_v63 }
 0x3ea   : > { %717 = vst.msk [vmem:[#allocation6] sm:$0xff] %vm716_vm8, %v714_v4 }
 0x3ed   : > { %v722_v5 = vpop.permute.xlu0 %721 }
 0x3ee   : > { %725 = vst.msk [vmem:[#allocation6] sm:$0xff] %vm724_vm9, %v722_v5 }
 0x3f5   : > { %v726_v6 = vld [vmem:[#allocation6] sm:$0xff] }
 0x3f6   : > { %993 = vmatmul.msk.f32.vlgmr.msra.gmra.mxu0 %vm398_vm0, %v726_v6 }
 0x3f7   : > { %1317 = shalt.err (!%p1314_p2)
}
 0x3f8   : > { %s1442_s22 = smov 128   ;;  %s1761_s12 = smov 8   ;;  %v1139_v7 = vld [vmem:[%s1745_s5] ss:$0 sm:$0xff] }
 0x3f9   : > { %1021 = dma.vmem_to_hbm [thread:$0]  (%p1575_p0), %s794_s16, 1024, %s796_s17, %s765_s21, %s1442_s22, %s1442_s22, %s1761_s12  }
 0x3fa   : > { %s996_s23 = sshll.u32 %s1408_s27, 3  ;;  %s778_s8 = sshll.u32 %s1646_s10, 4  ;;  %s779_s8 = int_to_ptr.vmem [resolvable:$true] %s778_s8 }
 0x3fb   : > { %s776_s1 = scalar_lea.hbm %s1746_s6, %s996_s23  ;;  %s760_s2 = scalar_lea.sflag [#allocation9], %s1595_s9 }
 0x3fc   : > { %s780_s14 = sshll.u32 %s776_s1, 4  ;;  %s1338_s22 = scalar_lea.hbm %s1746_s6, 16  ;;  %s781_s14 = int_to_ptr.hbm [resolvable:$true] %s780_s14 }
 0x3fd   : > { %s1332_s16 = sshra.s32 %s781_s14, 4  ;;  %s1333_s16 = int_to_ptr.hbm [resolvable:$true] %s1332_s16 }
 0x3fe   : > { %s1334_s27 = scalar_lea.hbm %s1333_s16, 8  ;;  %p1339_p1 = scmp.lt.s32.totalorder %s1333_s16, %s1746_s6 }
 0x3ff   : > { %p1335_p4 = scmp.ne.s32.totalorder %s1333_s16, %s1334_s27  ;;  %p1340_p3 = scmp.lt.s32.totalorder %s1338_s22, %s1334_s27 }
 0x401   : > { %p1336_p7 = pnand %p1335_p4, %p1575_p0  ;;  %p1341_p8 = por %p1340_p3, %p1339_p1 }
 0x403   : > { %p1337_p11 = pneg %p1336_p7 }
 0x405   : > { %p1342_p9 = pnand %p1341_p8, %p1337_p11 }
 0x473   : > { %v755_v8 = vpop.f32.mrf.mxu0 }
 0x474   : > { %v756_v9 = vadd.f32 %v1139_v7, %v755_v8 }
 0x476   : > { %758 = vst.msk [vmem:[%s1646_s10] sm:$0xff] %vm398_vm0, %v756_v9 }
 0x477   : > { %1345 = shalt.err (!%p1342_p9)
}
 0x478   : > { %1020 = dma.vmem_to_hbm [thread:$0]  (%p1575_p0), %s779_s8, 128, %s781_s14, %s760_s2  }
 0x479 PF: > { %s810_s9 = sand.u32 1, %s1396_s24   ;;  %p1042_p10 = pnand %p975_p6, %p1582_p5 }
 0x47a   : > { %s811_s10 = scalar_lea.sflag [#allocation9], %s810_s9 }
 0x47b   : > { %p1043_p12 = pneg %p1042_p10 }
 0x47d   : > { %1387 = dma.done.wait (%p1043_p12), %s811_s10, 128  }
 0x47e   : > { %1389 = vsyncadd (%p1043_p12), %s811_s10, 4294967168  ;;  %s821_s15 = scalar_lea.sflag [#allocation18], %s810_s9 }
 0x47f   : > { %1391 = dma.done.wait (%p1043_p12), %s821_s15, 1024  }
 0x480   : > { %1393 = vsyncadd (%p1043_p12), %s821_s15, 4294966272  ;;  %s29_s29 = sadd.s32 1, %s1416_s29   ;;  %s1762_s24 = smov %s1400_s25 }
 0x481   : > { %p26_p13 = scmp.ge.s32.totalorder %s29_s29, 4   ;;  %s1763_s25 = smov %s1404_s26 }
 0x482   : > { %s1764_s26 = smov %s1580_s20  ;;  %s1765_s27 = smov %s1412_s28 }
 0x483   : > { %s1766_s28 = smov %s1768_s18  ;;  %28 = sbr.rel (!%p26_p13) target bundleno = 14 (0xe), region = 178 }
 0x488   :  { %827 = vsyncpa [#allocation8], 1 }
 0x489   :  { %829 = vsyncpa [#allocation8 + $0x1], 1 }
 0x48a   :  { %830 = vsyncpa [#allocation11], 1 }
 0x48b   :  { %831 = vsyncpa [#allocation14], 1 }
 0x48c   :  { %832 = vsyncpa [#allocation9], 1 }
 0x48d   :  { %834 = vsyncpa [#allocation9 + $0x1], 1 }
 0x48e   :  { %835 = vsyncpa [#allocation18], 1 }
 0x48f   :  { %837 = vsyncpa [#allocation18 + $0x1], 1 }

</bundles_post_ra>
